<compile_context>
chip_gen: v5e
topology: v5e:2x2
jax: 0.10.0
libtpu: 0.0.40
codegen_flags: <defaults>
</compile_context>

<pallas_src>
import math
import jax
import jax.numpy as jnp
from jax.experimental import pallas as pl
from jax.experimental.pallas import tpu as pltpu

_SUBLANE = 8     # sublane count: batch tile kept a multiple of this
_LANE = 128      # vreg lane width (used only for VMEM headroom estimate)


def _round_up(x, m):
    return ((x + m - 1) // m) * m


def _vmem_cap_bytes():
    # Generation-aware VMEM cap (v7x has 64 MiB per TC vs 128 MiB on v5e/v6e).
    try:
        phys = int(pltpu.get_tpu_info().vmem_capacity_bytes)
    except Exception:
        phys = 64 * 1024 * 1024
    return max((phys * 3) // 4, 32 * 1024 * 1024)


def dqn_mlp_kernel(x_ref, w1_ref, b1_ref, w2_ref, b2_ref, w3_ref, b3_ref, o_ref):
    # Fused hot path: cast x to bf16 in-kernel, 3 bf16 MXU matmuls with f32
    # accumulation; bias add + ReLU in f32; intermediates re-cast to bf16 to keep
    # vreg pressure low before the next matmul.
    x = x_ref[...].astype(jnp.bfloat16)                                   # [bt, D_in]
    h = jnp.dot(x, w1_ref[...], preferred_element_type=jnp.float32) + b1_ref[...]
    h = jnp.maximum(h, 0.0).astype(jnp.bfloat16)
    h = jnp.dot(h, w2_ref[...], preferred_element_type=jnp.float32) + b2_ref[...]
    h = jnp.maximum(h, 0.0).astype(jnp.bfloat16)
    out = jnp.dot(h, w3_ref[...], preferred_element_type=jnp.float32) + b3_ref[...]
    o_ref[...] = out.astype(o_ref.dtype)


def prepare_params(w1, b1, w2, b2, w3, b3):
    """One-time weight/bias preparation (call ONCE, reuse across forward calls).
    Weights are stored [in_dim, out_dim] (so the kernel computes x @ W + b,
    matching PyTorch's x @ W.T + b); cast to bf16 here; biases -> (1, dim) f32."""
    bf16, f32 = jnp.bfloat16, jnp.float32
    return (w1.astype(bf16), b1.astype(f32).reshape(1, -1),
            w2.astype(bf16), b2.astype(f32).reshape(1, -1),
            w3.astype(bf16), b3.astype(f32).reshape(1, -1))


def dqn_mlp_forward(features, params, *, batch_tile=None):
    """features: [B, D_in] f32; params: output of prepare_params()."""
    w1, b1, w2, b2, w3, b3 = params
    B, D_in = features.shape
    H = w1.shape[1]
    D_out = w3.shape[1]
    assert w1.shape[0] == D_in and w2.shape == (H, H) and w3.shape[0] == H

    out_dtype = features.dtype
    out_itemsize = jnp.dtype(out_dtype).itemsize
    x_itemsize = jnp.dtype(features.dtype).itemsize

    # Batch tile: multiple of 8 sublanes; aim for >= 2 grid steps so the
    # "parallel" axis can shard across v7x's two TensorCores; cap at 1024 rows.
    if batch_tile is None:
        batch_tile = min(1024, max(_SUBLANE, _round_up(pl.cdiv(B, 2), _SUBLANE)))
    batch_tile = _round_up(batch_tile, _SUBLANE)
    Bp = _round_up(B, batch_tile)
    grid = (Bp // batch_tile,)

    # Only batch padding (if needed); feature dims stay at their natural widths.
    x_in = features if Bp == B else jnp.pad(features, ((0, Bp - B), (0, 0)))

    weight_bytes = (D_in * H + H * H + H * D_out) * 2 + (2 * H + D_out) * 4
    # Double-buffered streamed x/out tiles + single-buffered resident weights
    # + headroom for f32/bf16 intermediates.
    vmem_need = (2 * batch_tile * D_in * x_itemsize
                 + 2 * batch_tile * D_out * out_itemsize
                 + weight_bytes
                 + 6 * batch_tile * max(H, _LANE) * 4)
    vmem_limit = min(max(vmem_need, 32 * 1024 * 1024), _vmem_cap_bytes())

    cost = pl.CostEstimate(
        flops=2 * Bp * (D_in * H + H * H + H * D_out),
        transcendentals=0,
        bytes_accessed=Bp * D_in * x_itemsize + Bp * D_out * out_itemsize + weight_bytes,
    )

    resident = dict(pipeline_mode=pl.Buffered(1))   # constant blocks: single buffer

    out = pl.pallas_call(
        dqn_mlp_kernel,
        out_shape=jax.ShapeDtypeStruct((Bp, D_out), out_dtype),
        grid_spec=pltpu.PrefetchScalarGridSpec(
            num_scalar_prefetch=0,
            grid=grid,
            in_specs=[
                pl.BlockSpec((batch_tile, D_in), lambda i: (i, 0)),      # x (streamed)
                pl.BlockSpec((D_in, H), lambda i: (0, 0), **resident),   # W1 (resident)
                pl.BlockSpec((1, H), lambda i: (0, 0), **resident),      # b1
                pl.BlockSpec((H, H), lambda i: (0, 0), **resident),      # W2
                pl.BlockSpec((1, H), lambda i: (0, 0), **resident),      # b2
                pl.BlockSpec((H, D_out), lambda i: (0, 0), **resident),  # W3
                pl.BlockSpec((1, D_out), lambda i: (0, 0), **resident),  # b3
            ],
            out_specs=pl.BlockSpec((batch_tile, D_out), lambda i: (i, 0)),
        ),
        compiler_params=pltpu.CompilerParams(
            dimension_semantics=("parallel",),   # batch tiles shard across v7x TCs
            vmem_limit_bytes=vmem_limit,
        ),
        cost_estimate=cost,
    )(x_in, w1, b1, w2, b2, w3, b3)

    return out if Bp == B else out[:B]


def init_linear_params(key, in_dim, out_dim, dtype=jnp.float32):
    # PyTorch nn.Linear default init: U(-1/sqrt(fan_in), 1/sqrt(fan_in)).
    kw, kb = jax.random.split(key)
    bound = 1.0 / math.sqrt(in_dim)
    # Stored as [in_dim, out_dim] (transposed vs PyTorch's [out, in]).
    w = jax.random.uniform(kw, (in_dim, out_dim), dtype, minval=-bound, maxval=bound)
    b = jax.random.uniform(kb, (out_dim,), dtype, minval=-bound, maxval=bound)
    return w, b


if __name__ == "__main__":
    input_dim, hidden_dim, output_dim = 32, 64, 16
    batch = 8

    key = jax.random.PRNGKey(0)
    kx, k1, k2, k3 = jax.random.split(key, 4)

    x = jax.random.normal(kx, (batch, input_dim), jnp.float32)
    w1, b1 = init_linear_params(k1, input_dim, hidden_dim)
    w2, b2 = init_linear_params(k2, hidden_dim, hidden_dim)
    w3, b3 = init_linear_params(k3, hidden_dim, output_dim)

    # One-time weight preparation (hoisted out of the forward hot loop).
    params = prepare_params(w1, b1, w2, b2, w3, b3)

    fwd = jax.jit(dqn_mlp_forward)
    out = jax.block_until_ready(fwd(x, params))
    assert out.shape == (batch, output_dim)

    # Pure-JAX reference mirroring the kernel's numerics (bf16 operands, f32
    # accumulate, f32 bias/ReLU, bf16 re-cast of intermediates).
    def q(a):
        return a.astype(jnp.bfloat16).astype(jnp.float32)

    hi = jax.lax.Precision.HIGHEST
    h1 = jnp.maximum(jnp.dot(q(x), q(w1), precision=hi) + b1, 0.0)
    h2 = jnp.maximum(jnp.dot(q(h1), q(w2), precision=hi) + b2, 0.0)
    ref = jnp.dot(q(h2), q(w3), precision=hi) + b3
    assert jnp.allclose(out, ref, atol=2e-3, rtol=2e-3), "mismatch vs bf16-quantized reference"

    # Secondary sanity check against the full-f32 reference (bf16 quantization tolerance).
    h1f = jnp.maximum(x @ w1 + b1, 0.0)
    h2f = jnp.maximum(h1f @ w2 + b2, 0.0)
    ref_f32 = h2f @ w3 + b3
    assert jnp.allclose(out, ref_f32, atol=5e-2, rtol=5e-2), "mismatch vs f32 reference"

    # Exercise the multi-step grid + batch-padding path (grid=(2,), padded rows
    # sliced off) to confirm the v7x-friendly parallel tiling is also correct.
    batch2 = 20
    x2 = jax.random.normal(jax.random.PRNGKey(7), (batch2, input_dim), jnp.float32)
    out2 = jax.block_until_ready(fwd(x2, params))
    assert out2.shape == (batch2, output_dim)
    h1b = jnp.maximum(x2 @ w1 + b1, 0.0)
    h2b = jnp.maximum(h1b @ w2 + b2, 0.0)
    ref2 = h2b @ w3 + b3
    assert jnp.allclose(out2, ref2, atol=5e-2, rtol=5e-2), "mismatch on multi-tile batch"

    print("KERNEL_OK")
</pallas_src>

<mosaic_0001>
module attributes {stable_mosaic.version = 11 : i64} {
  func.func @dqn_mlp_kernel(%arg0: i32, %arg1: memref<8x32xf32, #tpu.memory_space<vmem>>, %arg2: memref<32x64xbf16, #tpu.memory_space<vmem>>, %arg3: memref<1x64xf32, #tpu.memory_space<vmem>>, %arg4: memref<64x64xbf16, #tpu.memory_space<vmem>>, %arg5: memref<1x64xf32, #tpu.memory_space<vmem>>, %arg6: memref<64x16xbf16, #tpu.memory_space<vmem>>, %arg7: memref<1x16xf32, #tpu.memory_space<vmem>>, %arg8: memref<8x16xf32, #tpu.memory_space<vmem>>) attributes {dimension_semantics = [#tpu.dimension_semantics<parallel>], iteration_bounds = array<i64: 1>, scalar_prefetch = 0 : i64, scratch_operands = 0 : i64, tpu.core_type = #tpu.core_type<tc>, window_params = [{transform_indices = @transform_0, window_bounds = array<i64: 8, 32>}, {pipeline_mode = #tpu.pipeline_mode<synchronous>, transform_indices = @transform_1, window_bounds = array<i64: 32, 64>}, {pipeline_mode = #tpu.pipeline_mode<synchronous>, transform_indices = @transform_2, window_bounds = array<i64: 1, 64>}, {pipeline_mode = #tpu.pipeline_mode<synchronous>, transform_indices = @transform_3, window_bounds = array<i64: 64, 64>}, {pipeline_mode = #tpu.pipeline_mode<synchronous>, transform_indices = @transform_4, window_bounds = array<i64: 1, 64>}, {pipeline_mode = #tpu.pipeline_mode<synchronous>, transform_indices = @transform_5, window_bounds = array<i64: 64, 16>}, {pipeline_mode = #tpu.pipeline_mode<synchronous>, transform_indices = @transform_6, window_bounds = array<i64: 1, 16>}, {transform_indices = @transform_7, window_bounds = array<i64: 8, 16>}]} {
    %c0 = arith.constant 0 : index
    %c0_0 = arith.constant 0 : index
    %0 = vector.load %arg1[%c0, %c0_0] : memref<8x32xf32, #tpu.memory_space<vmem>>, vector<8x32xf32>
    %1 = arith.truncf %0 : vector<8x32xf32> to vector<8x32xbf16>
    %c0_1 = arith.constant 0 : index
    %c0_2 = arith.constant 0 : index
    %2 = vector.load %arg2[%c0_1, %c0_2] : memref<32x64xbf16, #tpu.memory_space<vmem>>, vector<32x64xbf16>
    %cst = arith.constant dense<0.000000e+00> : vector<8x64xf32>
    %3 = tpu.matmul %1, %2, %cst {dimension_numbers = #tpu.dot_dimension_numbers<[1], [0], [0], [1], [0, 0, 1, 1], [], []>} : vector<8x32xbf16>, vector<32x64xbf16>, vector<8x64xf32> -> vector<8x64xf32>
    %c0_3 = arith.constant 0 : index
    %c0_4 = arith.constant 0 : index
    %4 = vector.load %arg3[%c0_3, %c0_4] : memref<1x64xf32, #tpu.memory_space<vmem>>, vector<1x64xf32>
    %5 = vector.broadcast %4 : vector<1x64xf32> to vector<8x64xf32>
    %6 = arith.addf %3, %5 : vector<8x64xf32>
    %cst_5 = arith.constant 0.000000e+00 : f32
    %7 = vector.broadcast %cst_5 : f32 to vector<8x64xf32>
    %8 = arith.maximumf %6, %7 : vector<8x64xf32>
    %9 = arith.truncf %8 : vector<8x64xf32> to vector<8x64xbf16>
    %c0_6 = arith.constant 0 : index
    %c0_7 = arith.constant 0 : index
    %10 = vector.load %arg4[%c0_6, %c0_7] : memref<64x64xbf16, #tpu.memory_space<vmem>>, vector<64x64xbf16>
    %cst_8 = arith.constant dense<0.000000e+00> : vector<8x64xf32>
    %11 = tpu.matmul %9, %10, %cst_8 {dimension_numbers = #tpu.dot_dimension_numbers<[1], [0], [0], [1], [0, 0, 1, 1], [], []>} : vector<8x64xbf16>, vector<64x64xbf16>, vector<8x64xf32> -> vector<8x64xf32>
    %c0_9 = arith.constant 0 : index
    %c0_10 = arith.constant 0 : index
    %12 = vector.load %arg5[%c0_9, %c0_10] : memref<1x64xf32, #tpu.memory_space<vmem>>, vector<1x64xf32>
    %13 = vector.broadcast %12 : vector<1x64xf32> to vector<8x64xf32>
    %14 = arith.addf %11, %13 : vector<8x64xf32>
    %cst_11 = arith.constant 0.000000e+00 : f32
    %15 = vector.broadcast %cst_11 : f32 to vector<8x64xf32>
    %16 = arith.maximumf %14, %15 : vector<8x64xf32>
    %17 = arith.truncf %16 : vector<8x64xf32> to vector<8x64xbf16>
    %c0_12 = arith.constant 0 : index
    %c0_13 = arith.constant 0 : index
    %18 = vector.load %arg6[%c0_12, %c0_13] : memref<64x16xbf16, #tpu.memory_space<vmem>>, vector<64x16xbf16>
    %cst_14 = arith.constant dense<0.000000e+00> : vector<8x16xf32>
    %19 = tpu.matmul %17, %18, %cst_14 {dimension_numbers = #tpu.dot_dimension_numbers<[1], [0], [0], [1], [0, 0, 1, 1], [], []>} : vector<8x64xbf16>, vector<64x16xbf16>, vector<8x16xf32> -> vector<8x16xf32>
    %c0_15 = arith.constant 0 : index
    %c0_16 = arith.constant 0 : index
    %20 = vector.load %arg7[%c0_15, %c0_16] : memref<1x16xf32, #tpu.memory_space<vmem>>, vector<1x16xf32>
    %21 = vector.broadcast %20 : vector<1x16xf32> to vector<8x16xf32>
    %22 = arith.addf %19, %21 : vector<8x16xf32>
    %c0_17 = arith.constant 0 : index
    %c0_18 = arith.constant 0 : index
    %23 = vector.load %arg8[%c0_17, %c0_18] : memref<8x16xf32, #tpu.memory_space<vmem>>, vector<8x16xf32>
    tpu.vector_store %arg8[%c0_17, %c0_18], %22 {strides = array<i32>} : memref<8x16xf32, #tpu.memory_space<vmem>>, vector<8x16xf32>,
    return
  }
  func.func @transform_0(%arg0: i32) -> (i32, i32) {
    %c0_i32 = arith.constant 0 : i32
    %c0_i32_0 = arith.constant 0 : i32
    return %arg0, %c0_i32 : i32, i32
  }
  func.func @transform_1(%arg0: i32) -> (i32, i32) {
    %c0_i32 = arith.constant 0 : i32
    %c0_i32_0 = arith.constant 0 : i32
    %c0_i32_1 = arith.constant 0 : i32
    return %c0_i32, %c0_i32_0 : i32, i32
  }
  func.func @transform_2(%arg0: i32) -> (i32, i32) {
    %c0_i32 = arith.constant 0 : i32
    %c0_i32_0 = arith.constant 0 : i32
    %c0_i32_1 = arith.constant 0 : i32
    return %c0_i32, %c0_i32_0 : i32, i32
  }
  func.func @transform_3(%arg0: i32) -> (i32, i32) {
    %c0_i32 = arith.constant 0 : i32
    %c0_i32_0 = arith.constant 0 : i32
    %c0_i32_1 = arith.constant 0 : i32
    return %c0_i32, %c0_i32_0 : i32, i32
  }
  func.func @transform_4(%arg0: i32) -> (i32, i32) {
    %c0_i32 = arith.constant 0 : i32
    %c0_i32_0 = arith.constant 0 : i32
    %c0_i32_1 = arith.constant 0 : i32
    return %c0_i32, %c0_i32_0 : i32, i32
  }
  func.func @transform_5(%arg0: i32) -> (i32, i32) {
    %c0_i32 = arith.constant 0 : i32
    %c0_i32_0 = arith.constant 0 : i32
    %c0_i32_1 = arith.constant 0 : i32
    return %c0_i32, %c0_i32_0 : i32, i32
  }
  func.func @transform_6(%arg0: i32) -> (i32, i32) {
    %c0_i32 = arith.constant 0 : i32
    %c0_i32_0 = arith.constant 0 : i32
    %c0_i32_1 = arith.constant 0 : i32
    return %c0_i32, %c0_i32_0 : i32, i32
  }
  func.func @transform_7(%arg0: i32) -> (i32, i32) {
    %c0_i32 = arith.constant 0 : i32
    %c0_i32_0 = arith.constant 0 : i32
    return %arg0, %c0_i32 : i32, i32
  }
}

</mosaic_0001>

<bundles_post_ra>
// kernel: dqn_mlp_forward.1
= control target key start
LH: loop header
LB: loop body
LE: loop exit
PB: predicated region body
PF: predicated region fallthrough
CT: control target
= control target key end

     0   :  { %12 = vsyncpa [#allocation3], 0  ;;  %s409_s0 = inlined_call_operand.vmem [shape: f32[8,32], index: 0, kind: input, shape index: {}]   ;;  %s410_s1 = inlined_call_operand.hbm [shape: bf16[32,64], index: 1, kind: input, shape index: {}]   ;;  %s411_s2 = inlined_call_operand.vmem [shape: f32[1,64], index: 2, kind: input, shape index: {}]   ;;  %s412_s3 = inlined_call_operand.vmem [shape: bf16[64,64], index: 3, kind: input, shape index: {}]   ;;  %s413_s4 = inlined_call_operand.vmem [shape: f32[1,64], index: 4, kind: input, shape index: {}]   ;;  %s414_s5 = inlined_call_operand.vmem [shape: bf16[64,16], index: 5, kind: input, shape index: {}]   ;;  %s415_s6 = inlined_call_operand.vmem [shape: f32[1,16], index: 6, kind: input, shape index: {}]   ;;  %s416_s7 = inlined_call_operand.hbm [shape: f32[8,16], index: 7, kind: output, shape index: {}]  }
   0x1   :  { %13 = vsyncpa [#allocation4], 0  ;;  %s20_s26 = sshll.u32 %s410_s1, 4  ;;  %s323_s27 = smov [#allocation2]   ;;  %s21_s26 = int_to_ptr.hbm [resolvable:$true] %s20_s26 }
   0x2   :  { %s22_s28 = sshll.u32 %s323_s27, 4  ;;  %s324_s29 = smov 64   ;;  %s23_s28 = int_to_ptr.vmem [resolvable:$true] %s22_s28 }
   0x3   :  { %s325_s30 = smov 4  }
   0x4   :  { %28 = dma.hbm_to_vmem [thread:$0]  %s21_s26, 256, %s23_s28, [#allocation3], %s324_s29, %s324_s29, %s325_s30  }
   0x5   :  { %319 = dma.done.wait [#allocation3], 256  }
   0x6   :  { %320 = vsyncadd [#allocation3], 4294967040  ;;  %v255_v0 = vld [vmem:[#allocation2 + $0x8] sm:$0xff]  ;;  %v254_v1 = vld [vmem:[#allocation2] sm:$0xff]  ;;  %vm66_vm0 = vcmask 261120   ;;  %vm121_vm1 = vcmask 523264  }
   0x7   :  { %v259_v2 = vld [vmem:[%s412_s3 + $0x18] sm:$0xff]  ;;  %76 = vmatpush.bf16.msra.mxu0 %v255_v0  ;;  %v44_v3 = vld [vmem:[%s409_s0] sm:$0xff]  ;;  %v258_v4 = vld [vmem:[%s412_s3 + $0x10] sm:$0xff]  ;;  %s326_s28 = smov [#allocation5]   ;;  %vm192_vm2 = vcmask 130048  }
   0x8   :  { %129 = vmatpush.bf16.msra.mxu1 %v259_v2  ;;  %v45_v5 = vpack.c.bf16 %v44_v3, %v44_v3  ;;  %v257_v6 = vld [vmem:[%s412_s3 + $0x8] sm:$0xff]  ;;  %v256_v7 = vld [vmem:[%s412_s3] sm:$0xff]  ;;  %v263_v8 = vld [vmem:[%s414_s5 + $0x18] sm:$0xff]  ;;  %s199_s29 = sshll.u32 %s326_s28, 4  ;;  %s200_s29 = int_to_ptr.vmem [resolvable:$true] %s199_s29 }
   0x9   :  { %183 = vmatpush.bf16.msra.mxu2 %v263_v8  ;;  %v262_v9 = vld [vmem:[%s414_s5 + $0x10] sm:$0xff]  ;;  %v268_v10 = vld [vmem:[%s411_s2] ss:$0 sm:$0xff]  ;;  %v261_v16 = vld [vmem:[%s414_s5 + $0x8] sm:$0xff] }
   0xa   :  { %v260_v17 = vld [vmem:[%s414_s5] sm:$0xff]  ;;  %s201_s5 = sshll.u32 %s416_s7, 4  ;;  %s202_s5 = int_to_ptr.hbm [resolvable:$true] %s201_s5 }
   0xb   :  { %77 = vmatpush.bf16.msra.mxu0 %v254_v1  ;;  %v269_v18 = vld [vmem:[%s413_s4] ss:$0 sm:$0xff] }
   0xc   :  { %130 = vmatpush.bf16.msra.mxu1 %v258_v4  ;;  %v270_v24 = vld [vmem:[%s415_s6] ss:$0 sm:$0xff] }
   0xd   :  { %184 = vmatpush.bf16.msra.mxu2 %v262_v9 }
   0xe   :  { %219 = vmatmul.msk.bf16.vlgmr.msra.gmra.mxu0 %vm66_vm0, %v45_v5 }
  0x10   :  { %131 = vmatpush.bf16.msra.mxu1 %v257_v6 }
  0x11   :  { %185 = vmatpush.bf16.msra.mxu2 %v261_v16 }
  0x14   :  { %132 = vmatpush.bf16.msra.mxu1 %v256_v7 }
  0x15   :  { %186 = vmatpush.bf16.msra.mxu2 %v260_v17 }
  0x8b   :  { %v79_v11 = vpop.f32.mrf.mxu0 }
  0x8c   :  { %v80_v12 = vadd.f32 %v268_v10, %v79_v11 }
  0x8e   :  { %v83_v13 = vmax.f32 %v80_v12, 0.0 }
  0x90   :  { %v84_v14 = vpack.c.bf16 %v83_v13, %v83_v13 }
  0x92   :  { %236 = vmatmul.msk.bf16.vlgmr.msra.gmra.mxu1 %vm121_vm1, %v84_v14 }
  0x93   :  { %v81_v15 = vpop.f32.mrf.mxu0 }
 0x10f   :  { %v134_v19 = vpop.f32.mrf.mxu1 }
 0x110   :  { %v135_v20 = vadd.f32 %v269_v18, %v134_v19 }
 0x112   :  { %v138_v21 = vmax.f32 %v135_v20, 0.0 }
 0x114   :  { %v139_v22 = vpack.c.bf16 %v138_v21, %v138_v21 }
 0x116   :  { %253 = vmatmul.msk.bf16.vlgmr.msra.gmra.mxu2 %vm121_vm1, %v139_v22 }
 0x117   :  { %v136_v23 = vpop.f32.mrf.mxu1 }
 0x199   :  { %v188_v25 = vpop.f32.mrf.mxu2 }
 0x19a   :  { %v189_v26 = vadd.f32 %v270_v24, %v188_v25 }
 0x19c   :  { %193 = vst.msk [vmem:[#allocation5] sm:$0xff] %vm192_vm2, %v189_v26 }
 0x19d   :  { %204 = dma.vmem_to_hbm [thread:$0]  %s200_s29, 128, %s202_s5, [#allocation4]  }
 0x1a1   :  { %v190_v27 = vpop.f32.mrf.mxu2 }
 0x1a2   :  { %321 = dma.done.wait [#allocation4], 128  }
 0x1a3   :  { %322 = vsyncadd [#allocation4], 4294967168 }
 0x1a4   :  { %209 = vsyncpa [#allocation3], 1 }
 0x1a5   :  { %210 = vsyncpa [#allocation4], 1 }

</bundles_post_ra>
